<compile_context>
chip_gen: v7x
topology: tpu7x:2x2x1
jax: 0.10.0
libtpu: 0.0.40
codegen_flags: <defaults>
</compile_context>

<pallas_src>
import jax
import jax.numpy as jnp
from jax.experimental import pallas as pl
from jax.experimental.pallas import tpu as pltpu


# ----------------------------------------------------------------------------
# Pallas kernel: one grid step = full MLP for one (weather row, x block)
# ----------------------------------------------------------------------------
def _make_step_kernel(num_layers: int):
    """Kernel body for `num_layers` Linear layers (tanh between all but last).

    Ref order (built by the wrapper):
      tidx_ref                      SMEM [S]        scalar prefetch (drives the
                                                    weather BlockSpec index_map)
      weather_ref                   VMEM [1, 1, Wd] table row tidx[s]
      x_ref                         VMEM [1, B, Fd] step s of the x batch
      w0_w, w0_x, b0, w1, b1, ...   VMEM            resident parameters
      out_ref                       VMEM [1, B, Fd]
    """

    def kernel(tidx_ref, weather_ref, x_ref, *refs):
        del tidx_ref  # weather row already selected via the BlockSpec index_map
        out_ref = refs[-1]
        wb = refs[:-1]  # (w0_w, w0_x, b0, w1, b1, ..., w_{L-1}, b_{L-1})

        x = x_ref[0]               # [B, func_dim]
        weather = weather_ref[0]   # [1, weather_dim]

        w0_w = wb[0][...]          # [weather_dim, h0]
        w0_x = wb[1][...]          # [func_dim,    h0]
        b0 = wb[2][...]            # [1, h0]

        # Split first matmul == concat([weather, x], -1) @ W0 + b0 (no concat).
        h = (jnp.dot(x, w0_x, preferred_element_type=jnp.float32)
             + jnp.dot(weather, w0_w, preferred_element_type=jnp.float32)
             + b0)
        if num_layers > 1:
            h = jnp.tanh(h)

        for i in range(1, num_layers):
            w = wb[2 * i + 1][...]
            b = wb[2 * i + 2][...]
            h = jnp.dot(h, w, preferred_element_type=jnp.float32) + b
            if i < num_layers - 1:
                h = jnp.tanh(h)

        out_ref[0] = h.astype(out_ref.dtype)

    return kernel


# ----------------------------------------------------------------------------
# ODEFunc in JAX
# ----------------------------------------------------------------------------
class ODEFuncPallas:
    def __init__(self, key, *, func_dim, weather_dim, fc_dims, weather_table,
                 start_time=0):
        self.func_dim = func_dim
        self.weather_dim = weather_dim
        self.start_time = start_time
        self.weather_table = jnp.asarray(weather_table, jnp.float32)  # [T, Wd]
        # [T, 1, Wd] view: the per-step (1, 1, Wd) block then equals the
        # array's last two dims, trivially satisfying the (8, 128) block rule.
        self._weather_table_k = self.weather_table[:, None, :]

        input_dim = func_dim + weather_dim
        if fc_dims:
            dims = [input_dim] + list(fc_dims) + [func_dim]
        else:
            dims = [input_dim, func_dim]

        # torch.nn.init.normal_(weight, std=0.1); bias = 0.  Weights stored as
        # [in, out] (transposed vs. torch) so the kernel computes x @ W + b.
        self.weights, self.biases = [], []
        for d_in, d_out in zip(dims[:-1], dims[1:]):
            key, sub = jax.random.split(key)
            self.weights.append(
                0.1 * jax.random.normal(sub, (d_in, d_out), dtype=jnp.float32))
            self.biases.append(jnp.zeros((1, d_out), dtype=jnp.float32))

        # Row-split of the first layer (done once at init, not per call):
        #   concat([weather, x]) @ W0 == weather @ W0[:Wd] + x @ W0[Wd:]
        self.w0_weather = self.weights[0][:weather_dim]
        self.w0_x = self.weights[0][weather_dim:]

    # ------------------------------------------------------------------ utils
    def _weather_indices(self, ts):
        # TODO(synk): the real Data.weather_at_time is an external dataset
        # query; here it is a deterministic synthetic table lookup by integer
        # time (indices are what the kernel consumes via scalar prefetch).
        return jnp.clip((ts + self.start_time).astype(jnp.int32),
                        0, self.weather_table.shape[0] - 1)

    # --------------------------------------------------------- fused evaluate
    def evaluate_steps(self, ts, xs):
        """Evaluate f(ts[s], xs[s]) for all steps in ONE pallas_call.

        ts: [S] float times (one per step, shared by that step's batch rows).
        xs: [S, B, func_dim] states.
        Returns [S, B, func_dim].
        """
        ts = jnp.asarray(ts, jnp.float32)
        xs = jnp.asarray(xs, jnp.float32)
        S, B, Fd = xs.shape
        assert Fd == self.func_dim
        Wd = self.weather_dim

        tidx = self._weather_indices(ts)  # [S] int32, scalar-prefetched to SMEM

        operands = [self._weather_table_k, xs,
                    self.w0_weather, self.w0_x, self.biases[0]]
        for w, b in zip(self.weights[1:], self.biases[1:]):
            operands += [w, b]

        in_specs = [
            # Weather row for step s, selected by the prefetched time index.
            pl.BlockSpec((1, 1, Wd), lambda s, ti: (ti[s], 0, 0)),
            # State block for step s.
            pl.BlockSpec((1, B, Fd), lambda s, ti: (s, 0, 0)),
        ]
        # Parameters: full-array blocks, same block index every step -> VMEM
        # resident (DMA'd once, reused across the whole grid).
        for op in operands[2:]:
            in_specs.append(pl.BlockSpec(op.shape, lambda s, ti: (0, 0)))

        out_spec = pl.BlockSpec((1, B, self.func_dim), lambda s, ti: (s, 0, 0))

        kernel = _make_step_kernel(len(self.weights))
        return pl.pallas_call(
            kernel,
            out_shape=jax.ShapeDtypeStruct((S, B, self.func_dim), jnp.float32),
            grid_spec=pltpu.PrefetchScalarGridSpec(
                num_scalar_prefetch=1,
                grid=(S,),
                in_specs=in_specs,
                out_specs=out_spec,
            ),
            compiler_params=pltpu.CompilerParams(
                dimension_semantics=("parallel",)),
        )(tidx, *operands)

    # --------------------------------------------------- torch-like forward()
    def __call__(self, t, x):
        t = jnp.atleast_1d(jnp.asarray(t, jnp.float32))
        x = jnp.atleast_2d(jnp.asarray(x, jnp.float32))
        if t.shape[0] == 1:
            # One time shared by the whole batch (usual ODE-solver convention):
            # a single fused step with M = batch fills the MXU rows.
            return self.evaluate_steps(t, x[None])[0]
        if t.shape[0] != x.shape[0]:
            raise ValueError("t must be scalar or have one entry per row of x")
        # Per-row times (original module semantics): one grid step per row so
        # each row gets its own weather lookup inside the kernel.
        return self.evaluate_steps(t, x[:, None, :])[:, 0, :]

    # ------------------------------------------------------- pure-JAX checks
    def reference_steps(self, ts, xs):
        ts = jnp.asarray(ts, jnp.float32)
        xs = jnp.asarray(xs, jnp.float32)
        S, B, _ = xs.shape
        weather = self.weather_table[self._weather_indices(ts)]       # [S, Wd]
        weather = jnp.broadcast_to(weather[:, None, :], (S, B, self.weather_dim))
        h = jnp.concatenate([weather, xs], axis=-1)
        for i, (w, b) in enumerate(zip(self.weights, self.biases)):
            h = h @ w + b
            if i < len(self.weights) - 1:
                h = jnp.tanh(h)
        return h

    def reference(self, t, x):
        t = jnp.atleast_1d(jnp.asarray(t, jnp.float32))
        x = jnp.atleast_2d(jnp.asarray(x, jnp.float32))
        if t.shape[0] == 1:
            return self.reference_steps(t, x[None])[0]
        return self.reference_steps(t, x[:, None, :])[:, 0, :]


# ----------------------------------------------------------------------------
# main
# ----------------------------------------------------------------------------
if __name__ == "__main__":
    key = jax.random.PRNGKey(0)

    batch = 8
    func_dim = 32
    weather_dim = 8
    fc_dims = [32, 16]
    num_times = 24
    num_steps = 6

    key, k_table, k_params, k_x, k_t, k_xs, k_ts = jax.random.split(key, 7)
    weather_table = jax.random.normal(
        k_table, (num_times, weather_dim), dtype=jnp.float32)

    odefunc = ODEFuncPallas(
        k_params,
        func_dim=func_dim,
        weather_dim=weather_dim,
        fc_dims=fc_dims,
        weather_table=weather_table,
        start_time=0,
    )

    # 1) Original call convention: per-row t.
    x = jax.random.normal(k_x, (batch, func_dim), dtype=jnp.float32)
    t = jax.random.uniform(k_t, (batch,), minval=0.0,
                           maxval=float(num_times - 1))
    out = jax.block_until_ready(odefunc(t, x))
    ref = jax.block_until_ready(odefunc.reference(t, x))
    assert out.shape == (batch, func_dim), out.shape
    assert jnp.allclose(out, ref, atol=1e-4, rtol=1e-4), float(
        jnp.max(jnp.abs(out - ref)))

    # 2) Scalar t shared by the batch (previously a broken corner case).
    t0 = jnp.float32(3.7)
    out0 = jax.block_until_ready(odefunc(t0, x))
    ref0 = jax.block_until_ready(odefunc.reference(t0, x))
    assert out0.shape == (batch, func_dim), out0.shape
    assert jnp.allclose(out0, ref0, atol=1e-4, rtol=1e-4), float(
        jnp.max(jnp.abs(out0 - ref0)))

    # 3) Fused multi-sample evaluation: S samples in ONE pallas_call with
    #    resident weights and in-kernel weather lookup.
    xs = jax.random.normal(k_xs, (num_steps, batch, func_dim),
                           dtype=jnp.float32)
    ts = jax.random.uniform(k_ts, (num_steps,), minval=0.0,
                            maxval=float(num_times - 1))
    outs = jax.block_until_ready(odefunc.evaluate_steps(ts, xs))
    refs = jax.block_until_ready(odefunc.reference_steps(ts, xs))
    assert outs.shape == (num_steps, batch, func_dim), outs.shape
    assert jnp.allclose(outs, refs, atol=1e-4, rtol=1e-4), float(
        jnp.max(jnp.abs(outs - refs)))

    print("KERNEL_OK")
</pallas_src>

<mosaic_0001>
module attributes {stable_mosaic.version = 11 : i64} {
  func.func @kernel(%arg0: i32, %arg1: memref<8xi32, #tpu.memory_space<smem>>, %arg2: memref<1x1x8xf32, #tpu.memory_space<vmem>>, %arg3: memref<1x1x32xf32, #tpu.memory_space<vmem>>, %arg4: memref<8x32xf32, #tpu.memory_space<vmem>>, %arg5: memref<32x32xf32, #tpu.memory_space<vmem>>, %arg6: memref<1x32xf32, #tpu.memory_space<vmem>>, %arg7: memref<32x16xf32, #tpu.memory_space<vmem>>, %arg8: memref<1x16xf32, #tpu.memory_space<vmem>>, %arg9: memref<16x32xf32, #tpu.memory_space<vmem>>, %arg10: memref<1x32xf32, #tpu.memory_space<vmem>>, %arg11: memref<1x1x32xf32, #tpu.memory_space<vmem>>) attributes {dimension_semantics = [#tpu.dimension_semantics<parallel>], iteration_bounds = array<i64: 8>, scalar_prefetch = 1 : i64, scratch_operands = 0 : i64, tpu.core_type = #tpu.core_type<tc>, window_params = [{transform_indices = @transform_0, window_bounds = array<i64: 1, 1, 8>}, {transform_indices = @transform_1, window_bounds = array<i64: 1, 1, 32>}, {pipeline_mode = #tpu.pipeline_mode<synchronous>, transform_indices = @transform_2, window_bounds = array<i64: 8, 32>}, {pipeline_mode = #tpu.pipeline_mode<synchronous>, transform_indices = @transform_3, window_bounds = array<i64: 32, 32>}, {pipeline_mode = #tpu.pipeline_mode<synchronous>, transform_indices = @transform_4, window_bounds = array<i64: 1, 32>}, {pipeline_mode = #tpu.pipeline_mode<synchronous>, transform_indices = @transform_5, window_bounds = array<i64: 32, 16>}, {pipeline_mode = #tpu.pipeline_mode<synchronous>, transform_indices = @transform_6, window_bounds = array<i64: 1, 16>}, {pipeline_mode = #tpu.pipeline_mode<synchronous>, transform_indices = @transform_7, window_bounds = array<i64: 16, 32>}, {pipeline_mode = #tpu.pipeline_mode<synchronous>, transform_indices = @transform_8, window_bounds = array<i64: 1, 32>}, {transform_indices = @transform_9, window_bounds = array<i64: 1, 1, 32>}]} {
    %c0 = arith.constant 0 : index
    %c0_0 = arith.constant 0 : index
    %c0_1 = arith.constant 0 : index
    %0 = vector.load %arg3[%c0, %c0_0, %c0_1] : memref<1x1x32xf32, #tpu.memory_space<vmem>>, vector<1x1x32xf32>
    %1 = vector.shape_cast %0 : vector<1x1x32xf32> to vector<1x32xf32>
    %c0_2 = arith.constant 0 : index
    %c0_3 = arith.constant 0 : index
    %c0_4 = arith.constant 0 : index
    %2 = vector.load %arg2[%c0_2, %c0_3, %c0_4] : memref<1x1x8xf32, #tpu.memory_space<vmem>>, vector<1x1x8xf32>
    %3 = vector.shape_cast %2 : vector<1x1x8xf32> to vector<1x8xf32>
    %c0_5 = arith.constant 0 : index
    %c0_6 = arith.constant 0 : index
    %4 = vector.load %arg4[%c0_5, %c0_6] : memref<8x32xf32, #tpu.memory_space<vmem>>, vector<8x32xf32>
    %c0_7 = arith.constant 0 : index
    %c0_8 = arith.constant 0 : index
    %5 = vector.load %arg5[%c0_7, %c0_8] : memref<32x32xf32, #tpu.memory_space<vmem>>, vector<32x32xf32>
    %c0_9 = arith.constant 0 : index
    %c0_10 = arith.constant 0 : index
    %6 = vector.load %arg6[%c0_9, %c0_10] : memref<1x32xf32, #tpu.memory_space<vmem>>, vector<1x32xf32>
    %cst = arith.constant dense<0.000000e+00> : vector<1x32xf32>
    %7 = tpu.matmul %1, %5, %cst {dimension_numbers = #tpu.dot_dimension_numbers<[1], [0], [0], [1], [0, 0, 1, 1], [], []>} : vector<1x32xf32>, vector<32x32xf32>, vector<1x32xf32> -> vector<1x32xf32>
    %cst_11 = arith.constant dense<0.000000e+00> : vector<1x32xf32>
    %8 = tpu.matmul %3, %4, %cst_11 {dimension_numbers = #tpu.dot_dimension_numbers<[1], [0], [0], [1], [0, 0, 1, 1], [], []>} : vector<1x8xf32>, vector<8x32xf32>, vector<1x32xf32> -> vector<1x32xf32>
    %9 = arith.addf %7, %8 : vector<1x32xf32>
    %10 = arith.addf %9, %6 : vector<1x32xf32>
    %11 = math.tanh %10 : vector<1x32xf32>
    %c0_12 = arith.constant 0 : index
    %c0_13 = arith.constant 0 : index
    %12 = vector.load %arg7[%c0_12, %c0_13] : memref<32x16xf32, #tpu.memory_space<vmem>>, vector<32x16xf32>
    %c0_14 = arith.constant 0 : index
    %c0_15 = arith.constant 0 : index
    %13 = vector.load %arg8[%c0_14, %c0_15] : memref<1x16xf32, #tpu.memory_space<vmem>>, vector<1x16xf32>
    %cst_16 = arith.constant dense<0.000000e+00> : vector<1x16xf32>
    %14 = tpu.matmul %11, %12, %cst_16 {dimension_numbers = #tpu.dot_dimension_numbers<[1], [0], [0], [1], [0, 0, 1, 1], [], []>} : vector<1x32xf32>, vector<32x16xf32>, vector<1x16xf32> -> vector<1x16xf32>
    %15 = arith.addf %14, %13 : vector<1x16xf32>
    %16 = math.tanh %15 : vector<1x16xf32>
    %c0_17 = arith.constant 0 : index
    %c0_18 = arith.constant 0 : index
    %17 = vector.load %arg9[%c0_17, %c0_18] : memref<16x32xf32, #tpu.memory_space<vmem>>, vector<16x32xf32>
    %c0_19 = arith.constant 0 : index
    %c0_20 = arith.constant 0 : index
    %18 = vector.load %arg10[%c0_19, %c0_20] : memref<1x32xf32, #tpu.memory_space<vmem>>, vector<1x32xf32>
    %cst_21 = arith.constant dense<0.000000e+00> : vector<1x32xf32>
    %19 = tpu.matmul %16, %17, %cst_21 {dimension_numbers = #tpu.dot_dimension_numbers<[1], [0], [0], [1], [0, 0, 1, 1], [], []>} : vector<1x16xf32>, vector<16x32xf32>, vector<1x32xf32> -> vector<1x32xf32>
    %20 = arith.addf %19, %18 : vector<1x32xf32>
    %c0_22 = arith.constant 0 : index
    %c0_23 = arith.constant 0 : index
    %c0_24 = arith.constant 0 : index
    %21 = vector.load %arg11[%c0_22, %c0_23, %c0_24] : memref<1x1x32xf32, #tpu.memory_space<vmem>>, vector<1x1x32xf32>
    %22 = vector.shape_cast %21 : vector<1x1x32xf32> to vector<1x32xf32>
    %23 = vector.shape_cast %20 : vector<1x32xf32> to vector<1x1x32xf32>
    tpu.vector_store %arg11[%c0_22, %c0_23, %c0_24], %23 {strides = array<i32>} : memref<1x1x32xf32, #tpu.memory_space<vmem>>, vector<1x1x32xf32>,
    return
  }
  func.func @transform_0(%arg0: i32, %arg1: memref<8xi32, #tpu.memory_space<smem>>) -> (i32, i32, i32) {
    %0 = arith.index_cast %arg0 : i32 to index
    %1 = memref.load %arg1[%0] : memref<8xi32, #tpu.memory_space<smem>>
    %c0_i32 = arith.constant 0 : i32
    %c0_i32_0 = arith.constant 0 : i32
    %c0_i32_1 = arith.constant 0 : i32
    return %1, %c0_i32, %c0_i32_0 : i32, i32, i32
  }
  func.func @transform_1(%arg0: i32, %arg1: memref<8xi32, #tpu.memory_space<smem>>) -> (i32, i32, i32) {
    %c0_i32 = arith.constant 0 : i32
    %c0_i32_0 = arith.constant 0 : i32
    %c0_i32_1 = arith.constant 0 : i32
    return %arg0, %c0_i32, %c0_i32_0 : i32, i32, i32
  }
  func.func @transform_2(%arg0: i32, %arg1: memref<8xi32, #tpu.memory_space<smem>>) -> (i32, i32) {
    %c0_i32 = arith.constant 0 : i32
    %c0_i32_0 = arith.constant 0 : i32
    %c0_i32_1 = arith.constant 0 : i32
    return %c0_i32, %c0_i32_0 : i32, i32
  }
  func.func @transform_3(%arg0: i32, %arg1: memref<8xi32, #tpu.memory_space<smem>>) -> (i32, i32) {
    %c0_i32 = arith.constant 0 : i32
    %c0_i32_0 = arith.constant 0 : i32
    %c0_i32_1 = arith.constant 0 : i32
    return %c0_i32, %c0_i32_0 : i32, i32
  }
  func.func @transform_4(%arg0: i32, %arg1: memref<8xi32, #tpu.memory_space<smem>>) -> (i32, i32) {
    %c0_i32 = arith.constant 0 : i32
    %c0_i32_0 = arith.constant 0 : i32
    %c0_i32_1 = arith.constant 0 : i32
    return %c0_i32, %c0_i32_0 : i32, i32
  }
  func.func @transform_5(%arg0: i32, %arg1: memref<8xi32, #tpu.memory_space<smem>>) -> (i32, i32) {
    %c0_i32 = arith.constant 0 : i32
    %c0_i32_0 = arith.constant 0 : i32
    %c0_i32_1 = arith.constant 0 : i32
    return %c0_i32, %c0_i32_0 : i32, i32
  }
  func.func @transform_6(%arg0: i32, %arg1: memref<8xi32, #tpu.memory_space<smem>>) -> (i32, i32) {
    %c0_i32 = arith.constant 0 : i32
    %c0_i32_0 = arith.constant 0 : i32
    %c0_i32_1 = arith.constant 0 : i32
    return %c0_i32, %c0_i32_0 : i32, i32
  }
  func.func @transform_7(%arg0: i32, %arg1: memref<8xi32, #tpu.memory_space<smem>>) -> (i32, i32) {
    %c0_i32 = arith.constant 0 : i32
    %c0_i32_0 = arith.constant 0 : i32
    %c0_i32_1 = arith.constant 0 : i32
    return %c0_i32, %c0_i32_0 : i32, i32
  }
  func.func @transform_8(%arg0: i32, %arg1: memref<8xi32, #tpu.memory_space<smem>>) -> (i32, i32) {
    %c0_i32 = arith.constant 0 : i32
    %c0_i32_0 = arith.constant 0 : i32
    %c0_i32_1 = arith.constant 0 : i32
    return %c0_i32, %c0_i32_0 : i32, i32
  }
  func.func @transform_9(%arg0: i32, %arg1: memref<8xi32, #tpu.memory_space<smem>>) -> (i32, i32, i32) {
    %c0_i32 = arith.constant 0 : i32
    %c0_i32_0 = arith.constant 0 : i32
    %c0_i32_1 = arith.constant 0 : i32
    return %arg0, %c0_i32, %c0_i32_0 : i32, i32, i32
  }
}

</mosaic_0001>

<bundles_post_ra>
// kernel: tpu_custom_call.1
= control target key start
LH: loop header
LB: loop body
LE: loop exit
PB: predicated region body
PF: predicated region fallthrough
CT: control target
= control target key end

     0   :  { %s1157_s0 = inlined_call_operand.vmem [shape: s32[8], index: 0, kind: input, shape index: {}]   ;;  %s1158_s1 = inlined_call_operand.vmem [shape: f32[24,1,8], index: 1, kind: input, shape index: {}]   ;;  %s1159_s2 = inlined_call_operand.vmem [shape: f32[8,1,32], index: 2, kind: input, shape index: {}]   ;;  %s1160_s3 = inlined_call_operand.vmem [shape: f32[8,32], index: 3, kind: input, shape index: {}]   ;;  %s1161_s4 = inlined_call_operand.vmem [shape: f32[32,32], index: 4, kind: input, shape index: {}]   ;;  %s1162_s5 = inlined_call_operand.vmem [shape: f32[1,32], index: 5, kind: input, shape index: {}]   ;;  %s1163_s6 = inlined_call_operand.vmem [shape: f32[32,16], index: 6, kind: input, shape index: {}]   ;;  %s1164_s7 = inlined_call_operand.vmem [shape: f32[1,16], index: 7, kind: input, shape index: {}]   ;;  %s1165_s8 = inlined_call_operand.vmem [shape: f32[16,32], index: 8, kind: input, shape index: {}]   ;;  %s1166_s9 = inlined_call_operand.vmem [shape: f32[1,32], index: 9, kind: input, shape index: {}]   ;;  %s1167_s10 = inlined_call_operand.hbm [shape: f32[8,1,32], index: 10, kind: output, shape index: {}]  }
   0x1   :  { %s15_s15 = sshll.u32 %s1157_s0, 4  ;;  %s16_s15 = int_to_ptr.vmem [resolvable:$true] %s15_s15 }
   0x2   :  { %s864_s16 = scalar_lea.vmem %s16_s15, 16  ;;  %p869_p1 = scmp.lt.s32.totalorder %s16_s15, %s16_s15 }
   0x3   :  { %p865_p0 = scmp.ne.s32.totalorder %s16_s15, %s864_s16  ;;  %p870_p2 = scmp.lt.s32.totalorder %s864_s16, %s864_s16 }
   0x5   :  { %p871_p3 = por %p870_p2, %p869_p1 }
   0x7   :  { %p872_p4 = pnand %p871_p3, %p865_p0 }
   0x9   :  { %875 = shalt.err (!%p872_p4)  }
   0xa   :  { %s942_s17 = smov [#allocation3]  }
   0xb   :  { %18 = dma.vmem_to_smem %s16_s15, 16, %s942_s17, [#allocation2] }
   0xc   :  { %920 = dma.done.wait [#allocation2], 16 }
   0xd   :  { %921 = vsyncadd [#allocation2], 4294967280 }
   0xe   :  { %20 = sfence }
   0xf   :  { %21 = vsyncpa [#allocation5], 0 }
  0x10   :  { %23 = vsyncpa [#allocation5 + $0x1], 0  ;;  %s1005_s18 = smov 0   ;;  %s1007_s19 = smov 0  }
  0x11   :  { %s1009_s0 = smov 0   ;;  %s1011_s20 = smov 0  }
  0x12 LB: > { %s1026_s21 = sadd.s32 4294967295, %s940_s20   ;;  %s742_s22 = sadd.s32 4294967294, %s940_s20   ;;  %s940_s20 = sphi %s1011_s20, %s1173_s20   ;;  %s936_s0 = sphi %s1009_s0, %s1172_s0   ;;  %s932_s19 = sphi %s1007_s19, %s1171_s19   ;;  %s928_s18 = sphi %s1005_s18, %s1170_s18  }
  0x13   : > { %s1030_s23 = sadd.s32 1, %s940_s20   ;;  %s237_s24 = sadd.s32 1, %s936_s0 }
  0x14   : > { %s234_s25 = ssub.s32 %s940_s20, %s1030_s23  ;;  %p247_p5 = scmp.ne.s32.totalorder %s936_s0, %s932_s19 }
  0x15   : > { %p235_p6 = scmp.eq.s32.totalorder %s234_s25, 0  ;;  %p248_p7 = scmp.eq.s32.totalorder %s1026_s21, 7 }
  0x16   : > { %p253_p8 = scmp.ne.s32.totalorder %s932_s19, %s928_s18  ;;  %p254_p9 = scmp.eq.s32.totalorder %s742_s22, 7 }
  0x17   : > { %s1041_s26 = scalar_select %p235_p6, %s936_s0, %s237_s24  }
  0x18   : > { %p1043_p10 = por %p248_p7, %p247_p5  ;;  %p1047_p11 = por %p254_p9, %p253_p8 }
  0x19   : > { %p745_p12 = scmp.ge.s32.totalorder %s940_s20, 1  ;;  %p307_p13 = scmp.lt.s32.totalorder %s940_s20, 9 }
  0x1b   : > { %p308_p0 = pnand %p745_p12, %p307_p13 }
  0x1c   : > { %v355_v0 = vld [vmem:[%s1161_s4] sm:$0xff] (!%p308_p0)  ;;  %v356_v1 = vld [vmem:[%s1161_s4 + $0x8] sm:$0xff] (!%p308_p0)  ;;  %v357_v2 = vld [vmem:[%s1161_s4 + $0x10] sm:$0xff] (!%p308_p0)  ;;  %v943_v3 = vmov (!%p308_p0), 0.0|0.0   ;;  %v944_v6 = vmov (!%p308_p0), 0.0   ;;  %p349_p1 = scmp.lt.s32.totalorder (!%p308_p0), %s1026_s21, 7 }
  0x1d   : > { %311 = sbr.rel (%p308_p0) target bundleno = 721 (0x2d1), region = 56  ;;  %802 = vmatprep.subr.bf16.mxu1 (!%p308_p0), %v943_v3  ;;  %v803_v4 = vpack.c.bf16 (!%p308_p0), %v356_v1, %v355_v0  ;;  %v358_v5 = vld [vmem:[%s1161_s4 + $0x18] sm:$0xff] (!%p308_p0)  ;;  %768 = vmatprep.subr.mxu0 (!%p308_p0), %v944_v6  ;;  %v354_v7 = vld [vmem:[%s1160_s3] sm:$0xff] (!%p308_p0)  ;;  %s344_s24 = sld [smem:[#allocation3 + %s1026_s21]] (!%p308_p0)  ;;  %vm945_vm0 = vmmov (!%p308_p0), 0   ;;  %vm434_vm1 = vcmask (!%p308_p0), 261120  }
  0x1e   : > { %781 = vmatprep.mubr.msk.f32.mxu1 (!%p308_p0), %vm945_vm0, %v944_v6  ;;  %769 = vmatpush3.msra.mxu0 (!%p308_p0), %v354_v7  ;;  %v806_v8 = vpack.c.bf16 (!%p308_p0), %v358_v5, %v357_v2  ;;  %vm360_vm2 = vcmask (!%p308_p0), 64512   ;;  %v510_v11 = vld [vmem:[%s1163_s6] sm:$0xff] (!%p308_p0)  ;;  %v511_v12 = vld [vmem:[%s1163_s6 + $0x8] sm:$0xff] (!%p308_p0)  ;;  %v512_v13 = vld [vmem:[%s1163_s6 + $0x10] sm:$0xff] (!%p308_p0)  ;;  %vm592_vm3 = vcmask (!%p308_p0), 130048   ;;  %s750_s30 = sshll.u32 (!%p308_p0), %s1026_s21, 4 }
  0x1f   : > { %804 = vmatpush3.bf16.msra.mxu1 (!%p308_p0), %v803_v4  ;;  %770 = vmatprep.mubr.msk.f32.mxu0 (!%p308_p0), %vm945_vm0, %v944_v6  ;;  %v809_v14 = vpack.c.bf16 (!%p308_p0), %v511_v12, %v510_v11  ;;  %v513_v15 = vld [vmem:[%s1163_s6 + $0x18] sm:$0xff] (!%p308_p0)  ;;  %v359_v19 = vld [vmem:[%s1162_s5] sm:$0x1] (!%p308_p0)  ;;  %v590_v26 = vld [vmem:[%s1165_s8 + $0x8] sm:$0xff] (!%p308_p0)  ;;  %vm666_vm4 = vcmask (!%p308_p0), 253952   ;;  %s1115_s15 = scalar_lea.hbm (!%p308_p0), %s1167_s10, %s750_s30 }
  0x20   : > { %805 = vmatprep.subr.bf16.mxu1 (!%p308_p0), %v943_v3  ;;  %808 = vmatprep.subr.bf16.mxu0 (!%p308_p0), %v943_v3  ;;  %v812_v16 = vpack.c.bf16 (!%p308_p0), %v513_v15, %v512_v13  ;;  %v589_v25 = vld [vmem:[%s1165_s8] sm:$0xff] (!%p308_p0) }
  0x21   : > { %v815_v27 = vpack.c.bf16 (!%p308_p0), %v590_v26, %v589_v25  ;;  %v514_v28 = vld [vmem:[%s1164_s7] sm:$0x1] (!%p308_p0) }
  0x22   : > { %v591_v33 = vld [vmem:[%s1166_s9] sm:$0x1] (!%p308_p0) }
  0x23   : > { %807 = vmatpush3.bf16.msra.mxu1 (!%p308_p0), %v806_v8  ;;  %p345_p2 = scmp.lt.s32.totalorder (!%p308_p0), %s344_s24, 23 }
  0x24   : > { %s350_s25 = scalar_select %p349_p1, %s1026_s21, 7  ;;  %814 = vmatprep.subr.bf16.mxu1 %v943_v3 }
  0x25   : > { %s1175_s24 = smov (!%p345_p2, %s344_s24), 23  ;;  %s946_s21 = smov [#allocation4]  }
  0x26   : > { %s351_s11 = scalar_lea.vmem %s1159_s2, %s350_s25  ;;  %s347_s14 = scalar_lea.vmem %s1158_s1, %s1175_s24 }
  0x27   : > { %v352_v9 = vld [vmem:[%s351_s11] sm:$0x1]  ;;  %s342_s25 = sand.u32 1, %s932_s19   ;;  %s880_s22 = sshll.u32 %s946_s21, 4  ;;  %s881_s22 = int_to_ptr.vmem [resolvable:$false] %s880_s22 }
  0x28   : > { %782 = vmatmul.mubr.msk.f32.vlgmr.msra.gmra.mrb[0].mxu1 %vm434_vm1, %v352_v9  ;;  %v353_v10 = vld [vmem:[%s347_s14] sm:$0x1]  ;;  %s343_s11 = scalar_lea.vmem [#allocation4], %s342_s25  ;;  %s669_s16 = scalar_lea.sflag [#allocation5], %s342_s25 }
  0x29   : > { %799 = vmatprep.mubr.msk.f32.mxu1 %vm945_vm0, %v944_v6  ;;  %771 = vmatmul.mubr.msk.f32.vlgmr.msra.gmra.mrb[0].mxu0 %vm360_vm2, %v353_v10  ;;  %s681_s12 = sshll.u32 %s343_s11, 4  ;;  %s882_s29 = scalar_lea.vmem %s881_s22, 32  ;;  %s1117_s12 = int_to_ptr.vmem [resolvable:$true] %s681_s12 }
  0x2a   : > { %792 = vmatprep.mubr.msk.f32.mxu0 %vm945_vm0, %v944_v6  ;;  %810 = vmatpush3.bf16.msra.mxu0 %v809_v14  ;;  %s876_s17 = scalar_lea.vmem %s1117_s12, 16  ;;  %p883_p6 = scmp.lt.s32.totalorder %s1117_s12, %s881_s22 }
  0x2b   : > { %811 = vmatprep.subr.bf16.mxu0 %v943_v3  ;;  %816 = vmatpush3.bf16.msra.mxu1 %v815_v27  ;;  %p877_p3 = scmp.ne.s32.totalorder %s1117_s12, %s876_s17  ;;  %p884_p7 = scmp.lt.s32.totalorder %s882_s29, %s876_s17 }
  0x2d   : > { %p878_p4 = pnand %p877_p3, %p1043_p10  ;;  %p885_p8 = por %p884_p7, %p883_p6 }
  0x2e   : > { %813 = vmatpush3.bf16.msra.mxu0 %v812_v16 }
  0x2f   : > { %p879_p5 = pneg %p878_p4 }
  0x31   : > { %p886_p9 = pnand %p885_p8, %p879_p5 }
  0xfb   : > { %v504_v17 = vpop.f32.mrb[0].mxu1 }
  0xfc   : > { %v783_v18 = vpop.f32.mrb[1].mxu1  ;;  %v430_v20 = vpop.f32.mrb[0].mxu0 }
  0xfd   : > { %v505_v21 = vadd.f32 %v504_v17, %v430_v20  ;;  %v772_v22 = vpop.f32.mrb[1].mxu0 }
  0xff   : > { %v508_v23 = vadd.f32 %v505_v21, %v359_v19 }
 0x101   : > { %860 = vtanh.f32 %v508_v23 }
 0x10b   : > { %v861_v24 = vpop.eup %860 }
 0x10c   : > { %793 = vmatmul.mubr.msk.f32.vlgmr.msra.gmra.mrb[2].mxu0 %vm434_vm1, %v861_v24 }
 0x1df   : > { %v584_v29 = vpop.f32.mrb[2].mxu0 }
 0x1e0   : > { %v585_v30 = vadd.f32 %v584_v29, %v514_v28  ;;  %v794_v31 = vpop.f32.mrb[3].mxu0 }
 0x1e2   : > { %862 = vtanh.f32 %v585_v30 }
 0x1ec   : > { %v863_v32 = vpop.eup %862 }
 0x1ed   : > { %800 = vmatmul.mubr.msk.f32.vlgmr.msra.gmra.mrb[2].mxu1 %vm592_vm3, %v863_v32 }
 0x2c0   : > { %v662_v34 = vpop.f32.mrb[2].mxu1 }
 0x2c1   : > { %v663_v35 = vadd.f32 %v662_v34, %v591_v33  ;;  %v801_v36 = vpop.f32.mrb[3].mxu1 }
 0x2c3   : > { %667 = vst.msk [vmem:[%s343_s11] sm:$0x1] %vm666_vm4, %v663_v35 }
 0x2c4   : > { %889 = shalt.err (!%p886_p9)
}
 0x2c5   : > { %s890_s25 = scalar_lea.hbm %s1115_s15, 16  ;;  %s894_s11 = scalar_lea.hbm %s1167_s10, 128 }
 0x2c6   : > { %p891_p12 = scmp.ne.s32.totalorder %s1115_s15, %s890_s25  ;;  %p895_p1 = scmp.lt.u32.totalorder %s1115_s15, %s1167_s10 }
 0x2c7   : > { %p896_p2 = scmp.lt.u32.totalorder %s894_s11, %s890_s25  ;;  %p898_p4 = scmp.lt.u32.totalorder %s890_s25, %s1115_s15 }
 0x2c8   : > { %p892_p13 = pnand %p891_p12, %p1043_p10 }
 0x2c9   : > { %p897_p3 = por %p896_p2, %p895_p1 }
 0x2ca   : > { %p893_p0 = pneg %p892_p13 }
 0x2cb   : > { %p899_p5 = por %p898_p4, %p897_p3 }
 0x2cd   : > { %p900_p6 = pnand %p899_p5, %p893_p0 }
 0x2cf   : > { %903 = shalt.err (!%p900_p6)
}
 0x2d0   : > { %817 = dma.vmem_to_hbm [thread:$0]  (%p1043_p10), %s1117_s12, 16, %s1115_s15, %s669_s16  }
 0x2d1 PF: > { %p823_p7 = scmp.ge.s32.totalorder %s940_s20, 2  ;;  %s693_s17 = sand.u32 1, %s928_s18  }
 0x2d2   : > { %s694_s21 = scalar_lea.sflag [#allocation5], %s693_s17 }
 0x2d3   : > { %p820_p8 = pnand %p823_p7, %p1047_p11 }
 0x2d5   : > { %923 = dma.done.wait (!%p820_p8), %s694_s21, 16  }
 0x2d6   : > { %925 = vsyncadd (!%p820_p8), %s694_s21, 4294967280  ;;  %p26_p9 = scmp.ge.s32.totalorder %s1030_s23, 10   ;;  %s1170_s18 = smov %s932_s19 }
 0x2d7   : > { %s1171_s19 = smov %s936_s0  ;;  %s1172_s0 = smov %s1041_s26 }
 0x2d8   : > { %s1173_s20 = smov %s1030_s23  ;;  %28 = sbr.rel (!%p26_p9) target bundleno = 18 (0x12), region = 94 }
 0x2df   :  { %698 = vsyncpa [#allocation5], 1 }
 0x2e0   :  { %700 = vsyncpa [#allocation5 + $0x1], 1 }

</bundles_post_ra>
